<compile_context>
chip_gen: v7x
topology: tpu7x:2x2x1
jax: 0.10.0
libtpu: 0.0.40
codegen_flags: <defaults>
</compile_context>

<pallas_src>
import functools

import jax
import jax.numpy as jnp
from jax.experimental import pallas as pl
from jax.experimental.pallas import tpu as pltpu


def lstm_cell_kernel(x_ref, h0_ref, c0_ref, wx_ref, wh_ref, b_ref,
                     h1_ref, c1_ref):
    H = c0_ref.shape[-1]

    # Cast activations to bf16 in-kernel (MXU inputs), keep f32 accumulation.
    x = x_ref[...].astype(jnp.bfloat16)      # (bb, I)
    h0 = h0_ref[...].astype(jnp.bfloat16)    # (bb, H)

    # ---- Chain 1: [i | f | g] gates (first 3H columns). ----
    g_ifg = (
        jnp.dot(x, wx_ref[:, : 3 * H], preferred_element_type=jnp.float32)
        + jnp.dot(h0, wh_ref[:, : 3 * H], preferred_element_type=jnp.float32)
        + b_ref[:, : 3 * H]
    )                                         # (bb, 3H) f32

    sig_if = jax.nn.sigmoid(g_ifg[:, : 2 * H])   # coalesced sigmoid over [i|f]
    ingate = sig_if[:, :H]
    forgetgate = sig_if[:, H: 2 * H]
    cellgate = jnp.tanh(g_ifg[:, 2 * H: 3 * H])

    c0 = c0_ref[...].astype(jnp.float32)
    c1 = forgetgate * c0 + ingate * cellgate
    tanh_c1 = jnp.tanh(c1)

    # ---- Chain 2: output gate (last H columns); its MXU streaming overlaps
    # ---- the EUP/VPU work above (independent chains, different VLIW slots).
    g_o = (
        jnp.dot(x, wx_ref[:, 3 * H:], preferred_element_type=jnp.float32)
        + jnp.dot(h0, wh_ref[:, 3 * H:], preferred_element_type=jnp.float32)
        + b_ref[:, 3 * H:]
    )                                         # (bb, H) f32
    outgate = jax.nn.sigmoid(g_o)
    h1 = outgate * tanh_c1

    c1_ref[...] = c1.astype(c1_ref.dtype)
    h1_ref[...] = h1.astype(h1_ref.dtype)


def prepare_params(w_ih, b_ih, w_hh, b_hh, dropconnect=0.0):
    """Hoisted parameter prep: once per model, NOT once per timestep.

    Torch layout in: w_ih (4H, I), w_hh (4H, H), biases (4H,).
    Torch gate row order is [i | f | o | g]; we reorder to [i | f | g | o] so
    the kernel can split the matmul into an [i|f|g] chain and an [o] chain.

    Returns: w_x (I, 4H) bf16, w_h (H, 4H) bf16, bias (1, 4H) f32.
    """
    H4 = w_ih.shape[0]
    H = H4 // 4
    # torch order [i, f, o, g]  ->  kernel order [i, f, g, o]
    perm = jnp.concatenate([
        jnp.arange(0 * H, 1 * H),   # i
        jnp.arange(1 * H, 2 * H),   # f
        jnp.arange(3 * H, 4 * H),   # g
        jnp.arange(2 * H, 3 * H),   # o
    ])
    w_x = jnp.transpose(w_ih[perm]).astype(jnp.bfloat16)                       # (I, 4H)
    w_h = jnp.transpose((w_hh * (1.0 - dropconnect))[perm]).astype(jnp.bfloat16)  # (H, 4H)
    bias = (b_ih + b_hh)[perm].reshape(1, H4).astype(jnp.float32)
    return w_x, w_h, bias


def _vmem_limit_bytes(bb, I, H):
    """Explicit scoped-VMEM budget for this kernel (weights single-buffered)."""
    weight_bytes = (I + H) * 4 * H * 2 + 4 * H * 4          # bf16 W + f32 bias, x1
    act_in = 2 * bb * (I + 2 * H) * 4                       # x/h0/c0, double-buffered
    act_out = 2 * 2 * bb * H * 4                            # h1/c1, double-buffered
    scratch = 4 * bb * 4 * H * 4                            # gate intermediates headroom
    need = int((weight_bytes + act_in + act_out + scratch) * 1.25)
    try:
        cap = int(pltpu.get_tpu_info().vmem_capacity_bytes)
    except Exception:  # pragma: no cover - conservative fallback (v7x-sized)
        cap = 64 * 1024 * 1024
    return int(max(32 * 1024 * 1024, min(need, int(cap * 0.75))))


@functools.partial(jax.jit, static_argnames=("block_b",))
def lstm_cell_forward(inputs, h0, c0, w_x, w_h, bias, *, block_b=256):
    """Eval-mode ONLSTM LSTMCell forward. Returns (h1, c1), each (B, H) f32."""
    B, I = inputs.shape
    H = h0.shape[-1]
    assert w_x.shape == (I, 4 * H) and w_h.shape == (H, 4 * H)
    assert bias.shape == (1, 4 * H)

    # Batch tiling: keep bb = block_b (256 default: fills the 256-wide MXU on
    # v6e/v7x and amortizes per-grid-step overhead); pad B up to a multiple so
    # the grid never collapses to one giant block.
    bb = min(block_b, B)
    B_pad = pl.cdiv(B, bb) * bb
    if B_pad != B:
        pad = B_pad - B
        inputs = jnp.pad(inputs, ((0, pad), (0, 0)))
        h0 = jnp.pad(h0, ((0, pad), (0, 0)))
        c0 = jnp.pad(c0, ((0, pad), (0, 0)))
    grid = (B_pad // bb,)

    out_shapes = (
        jax.ShapeDtypeStruct((B_pad, H), jnp.float32),   # h1
        jax.ShapeDtypeStruct((B_pad, H), jnp.float32),   # c1
    )

    weight_bytes = (I + H) * 4 * H * 2 + 4 * H * 4
    cost = pl.CostEstimate(
        flops=2 * B_pad * (I + H) * 4 * H,
        transcendentals=B_pad * 5 * H,
        bytes_accessed=weight_bytes + B_pad * (I + 2 * H) * 4 + B_pad * 2 * H * 4,
    )

    h1, c1 = pl.pallas_call(
        lstm_cell_kernel,
        out_shape=out_shapes,
        grid_spec=pltpu.PrefetchScalarGridSpec(
            num_scalar_prefetch=0,
            grid=grid,
            in_specs=[
                pl.BlockSpec((bb, I), lambda b: (b, 0)),          # x tile
                pl.BlockSpec((bb, H), lambda b: (b, 0)),          # h0 tile
                pl.BlockSpec((bb, H), lambda b: (b, 0)),          # c0 tile
                # Resident params: constant index_map -> single-buffer them.
                pl.BlockSpec((I, 4 * H), lambda b: (0, 0),
                             pipeline_mode=pl.Buffered(1)),        # w_x
                pl.BlockSpec((H, 4 * H), lambda b: (0, 0),
                             pipeline_mode=pl.Buffered(1)),        # w_h
                pl.BlockSpec((1, 4 * H), lambda b: (0, 0),
                             pipeline_mode=pl.Buffered(1)),        # bias
            ],
            out_specs=[
                pl.BlockSpec((bb, H), lambda b: (b, 0)),          # h1
                pl.BlockSpec((bb, H), lambda b: (b, 0)),          # c1
            ],
        ),
        compiler_params=pltpu.CompilerParams(
            dimension_semantics=("parallel",),       # batch tiles -> megacore / 2 TCs
            vmem_limit_bytes=_vmem_limit_bytes(bb, I, H),
        ),
        cost_estimate=cost,
    )(inputs, h0, c0, w_x, w_h, bias)

    if B_pad != B:
        h1 = h1[:B]
        c1 = c1[:B]
    return h1, c1


def lstm_cell_reference(inputs, h0, c0, w_ih, b_ih, w_hh, b_hh, dropconnect=0.0):
    """Pure-JAX f32 reference mirroring the PyTorch eval-mode forward."""
    H = h0.shape[-1]
    transformed = inputs @ w_ih.T + b_ih
    gates = transformed + h0 @ (w_hh * (1.0 - dropconnect)).T + b_hh
    g = gates.reshape(-1, 4, H)
    ingate, forgetgate, outgate, cell = g[:, 0], g[:, 1], g[:, 2], g[:, 3]
    ingate = jax.nn.sigmoid(ingate)
    forgetgate = jax.nn.sigmoid(forgetgate)
    outgate = jax.nn.sigmoid(outgate)
    cell = jnp.tanh(cell)
    c1 = forgetgate * c0 + ingate * cell
    h1 = outgate * jnp.tanh(c1)
    return h1, c1


if __name__ == "__main__":
    B = 8
    INPUT_SIZE = 32
    HIDDEN_SIZE = 32

    key = jax.random.PRNGKey(0)
    k_x, k_h, k_c, k_wih, k_bih, k_whh, k_bhh = jax.random.split(key, 7)

    x = jax.random.normal(k_x, (B, INPUT_SIZE), dtype=jnp.float32)
    h0 = jax.random.normal(k_h, (B, HIDDEN_SIZE), dtype=jnp.float32)
    c0 = jax.random.normal(k_c, (B, HIDDEN_SIZE), dtype=jnp.float32)

    bound_ih = 1.0 / (INPUT_SIZE ** 0.5)
    bound_hh = 1.0 / (HIDDEN_SIZE ** 0.5)
    w_ih = jax.random.uniform(k_wih, (4 * HIDDEN_SIZE, INPUT_SIZE),
                              minval=-bound_ih, maxval=bound_ih, dtype=jnp.float32)
    b_ih = jax.random.uniform(k_bih, (4 * HIDDEN_SIZE,),
                              minval=-bound_ih, maxval=bound_ih, dtype=jnp.float32)
    w_hh = jax.random.uniform(k_whh, (4 * HIDDEN_SIZE, HIDDEN_SIZE),
                              minval=-bound_hh, maxval=bound_hh, dtype=jnp.float32)
    b_hh = jax.random.uniform(k_bhh, (4 * HIDDEN_SIZE,),
                              minval=-bound_hh, maxval=bound_hh, dtype=jnp.float32)

    # bf16 matmul inputs -> loosened tolerance vs the f32 reference.
    ATOL = 2e-2
    RTOL = 2e-2

    for dropconnect in (0.0, 0.25):
        w_x, w_h, bias = prepare_params(w_ih, b_ih, w_hh, b_hh, dropconnect)
        h1, c1 = lstm_cell_forward(x, h0, c0, w_x, w_h, bias)
        jax.block_until_ready((h1, c1))

        h1_ref, c1_ref = lstm_cell_reference(x, h0, c0, w_ih, b_ih, w_hh, b_hh,
                                             dropconnect)
        assert h1.shape == h1_ref.shape and c1.shape == c1_ref.shape
        assert jnp.allclose(h1, h1_ref, atol=ATOL, rtol=RTOL), \
            f"h1 mismatch (dropconnect={dropconnect})"
        assert jnp.allclose(c1, c1_ref, atol=ATOL, rtol=RTOL), \
            f"c1 mismatch (dropconnect={dropconnect})"

    print("KERNEL_OK")
</pallas_src>

<mosaic_0001>
module attributes {stable_mosaic.version = 11 : i64} {
  func.func @lstm_cell_kernel(%arg0: i32, %arg1: memref<8x32xf32, #tpu.memory_space<vmem>>, %arg2: memref<8x32xf32, #tpu.memory_space<vmem>>, %arg3: memref<8x32xf32, #tpu.memory_space<vmem>>, %arg4: memref<32x128xbf16, #tpu.memory_space<vmem>>, %arg5: memref<32x128xbf16, #tpu.memory_space<vmem>>, %arg6: memref<1x128xf32, #tpu.memory_space<vmem>>, %arg7: memref<8x32xf32, #tpu.memory_space<vmem>>, %arg8: memref<8x32xf32, #tpu.memory_space<vmem>>) attributes {dimension_semantics = [#tpu.dimension_semantics<parallel>], iteration_bounds = array<i64: 1>, scalar_prefetch = 0 : i64, scratch_operands = 0 : i64, tpu.core_type = #tpu.core_type<tc>, window_params = [{transform_indices = @transform_0, window_bounds = array<i64: 8, 32>}, {transform_indices = @transform_1, window_bounds = array<i64: 8, 32>}, {transform_indices = @transform_2, window_bounds = array<i64: 8, 32>}, {pipeline_mode = #tpu.pipeline_mode<synchronous>, transform_indices = @transform_3, window_bounds = array<i64: 32, 128>}, {pipeline_mode = #tpu.pipeline_mode<synchronous>, transform_indices = @transform_4, window_bounds = array<i64: 32, 128>}, {pipeline_mode = #tpu.pipeline_mode<synchronous>, transform_indices = @transform_5, window_bounds = array<i64: 1, 128>}, {transform_indices = @transform_6, window_bounds = array<i64: 8, 32>}, {transform_indices = @transform_7, window_bounds = array<i64: 8, 32>}]} {
    %c0 = arith.constant 0 : index
    %c0_0 = arith.constant 0 : index
    %0 = vector.load %arg1[%c0, %c0_0] : memref<8x32xf32, #tpu.memory_space<vmem>>, vector<8x32xf32>
    %1 = arith.truncf %0 : vector<8x32xf32> to vector<8x32xbf16>
    %c0_1 = arith.constant 0 : index
    %c0_2 = arith.constant 0 : index
    %2 = vector.load %arg2[%c0_1, %c0_2] : memref<8x32xf32, #tpu.memory_space<vmem>>, vector<8x32xf32>
    %3 = arith.truncf %2 : vector<8x32xf32> to vector<8x32xbf16>
    %c0_3 = arith.constant 0 : index
    %c0_4 = arith.constant 0 : index
    %4 = vector.load %arg4[%c0_3, %c0_4] : memref<32x128xbf16, #tpu.memory_space<vmem>>, vector<32x96xbf16>
    %cst = arith.constant dense<0.000000e+00> : vector<8x96xf32>
    %5 = tpu.matmul %1, %4, %cst {dimension_numbers = #tpu.dot_dimension_numbers<[1], [0], [0], [1], [0, 0, 1, 1], [], []>} : vector<8x32xbf16>, vector<32x96xbf16>, vector<8x96xf32> -> vector<8x96xf32>
    %c0_5 = arith.constant 0 : index
    %c0_6 = arith.constant 0 : index
    %6 = vector.load %arg5[%c0_5, %c0_6] : memref<32x128xbf16, #tpu.memory_space<vmem>>, vector<32x96xbf16>
    %cst_7 = arith.constant dense<0.000000e+00> : vector<8x96xf32>
    %7 = tpu.matmul %3, %6, %cst_7 {dimension_numbers = #tpu.dot_dimension_numbers<[1], [0], [0], [1], [0, 0, 1, 1], [], []>} : vector<8x32xbf16>, vector<32x96xbf16>, vector<8x96xf32> -> vector<8x96xf32>
    %8 = arith.addf %5, %7 : vector<8x96xf32>
    %c0_8 = arith.constant 0 : index
    %c0_9 = arith.constant 0 : index
    %9 = vector.load %arg6[%c0_8, %c0_9] : memref<1x128xf32, #tpu.memory_space<vmem>>, vector<1x96xf32>
    %10 = vector.broadcast %9 : vector<1x96xf32> to vector<8x96xf32>
    %11 = arith.addf %8, %10 : vector<8x96xf32>
    %12 = vector.extract_strided_slice %11 {offsets = [0, 0], sizes = [8, 64], strides = [1, 1]} : vector<8x96xf32> to vector<8x64xf32>
    %13 = arith.negf %12 : vector<8x64xf32>
    %14 = math.exp %13 : vector<8x64xf32>
    %cst_10 = arith.constant 1.000000e+00 : f32
    %15 = vector.broadcast %cst_10 : f32 to vector<8x64xf32>
    %16 = arith.addf %15, %14 : vector<8x64xf32>
    %17 = arith.divf %15, %16 : vector<8x64xf32>
    %18 = vector.extract_strided_slice %17 {offsets = [0, 0], sizes = [8, 32], strides = [1, 1]} : vector<8x64xf32> to vector<8x32xf32>
    %19 = vector.extract_strided_slice %17 {offsets = [0, 32], sizes = [8, 32], strides = [1, 1]} : vector<8x64xf32> to vector<8x32xf32>
    %20 = vector.extract_strided_slice %11 {offsets = [0, 64], sizes = [8, 32], strides = [1, 1]} : vector<8x96xf32> to vector<8x32xf32>
    %21 = math.tanh %20 : vector<8x32xf32>
    %c0_11 = arith.constant 0 : index
    %c0_12 = arith.constant 0 : index
    %22 = vector.load %arg3[%c0_11, %c0_12] : memref<8x32xf32, #tpu.memory_space<vmem>>, vector<8x32xf32>
    %23 = arith.mulf %19, %22 : vector<8x32xf32>
    %24 = arith.mulf %18, %21 : vector<8x32xf32>
    %25 = arith.addf %23, %24 : vector<8x32xf32>
    %26 = math.tanh %25 : vector<8x32xf32>
    %c0_13 = arith.constant 0 : index
    %c96 = arith.constant 96 : index
    %27 = vector.load %arg4[%c0_13, %c96] : memref<32x128xbf16, #tpu.memory_space<vmem>>, vector<32x32xbf16>
    %cst_14 = arith.constant dense<0.000000e+00> : vector<8x32xf32>
    %28 = tpu.matmul %1, %27, %cst_14 {dimension_numbers = #tpu.dot_dimension_numbers<[1], [0], [0], [1], [0, 0, 1, 1], [], []>} : vector<8x32xbf16>, vector<32x32xbf16>, vector<8x32xf32> -> vector<8x32xf32>
    %c0_15 = arith.constant 0 : index
    %c96_16 = arith.constant 96 : index
    %29 = vector.load %arg5[%c0_15, %c96_16] : memref<32x128xbf16, #tpu.memory_space<vmem>>, vector<32x32xbf16>
    %cst_17 = arith.constant dense<0.000000e+00> : vector<8x32xf32>
    %30 = tpu.matmul %3, %29, %cst_17 {dimension_numbers = #tpu.dot_dimension_numbers<[1], [0], [0], [1], [0, 0, 1, 1], [], []>} : vector<8x32xbf16>, vector<32x32xbf16>, vector<8x32xf32> -> vector<8x32xf32>
    %31 = arith.addf %28, %30 : vector<8x32xf32>
    %c0_18 = arith.constant 0 : index
    %c96_19 = arith.constant 96 : index
    %32 = vector.load %arg6[%c0_18, %c96_19] : memref<1x128xf32, #tpu.memory_space<vmem>>, vector<1x32xf32>
    %33 = vector.broadcast %32 : vector<1x32xf32> to vector<8x32xf32>
    %34 = arith.addf %31, %33 : vector<8x32xf32>
    %35 = arith.negf %34 : vector<8x32xf32>
    %36 = math.exp %35 : vector<8x32xf32>
    %cst_20 = arith.constant 1.000000e+00 : f32
    %37 = vector.broadcast %cst_20 : f32 to vector<8x32xf32>
    %38 = arith.addf %37, %36 : vector<8x32xf32>
    %39 = arith.divf %37, %38 : vector<8x32xf32>
    %40 = arith.mulf %39, %26 : vector<8x32xf32>
    %c0_21 = arith.constant 0 : index
    %c0_22 = arith.constant 0 : index
    %41 = vector.load %arg8[%c0_21, %c0_22] : memref<8x32xf32, #tpu.memory_space<vmem>>, vector<8x32xf32>
    tpu.vector_store %arg8[%c0_21, %c0_22], %25 {strides = array<i32>} : memref<8x32xf32, #tpu.memory_space<vmem>>, vector<8x32xf32>,
    %c0_23 = arith.constant 0 : index
    %c0_24 = arith.constant 0 : index
    %42 = vector.load %arg7[%c0_23, %c0_24] : memref<8x32xf32, #tpu.memory_space<vmem>>, vector<8x32xf32>
    tpu.vector_store %arg7[%c0_23, %c0_24], %40 {strides = array<i32>} : memref<8x32xf32, #tpu.memory_space<vmem>>, vector<8x32xf32>,
    return
  }
  func.func @transform_0(%arg0: i32) -> (i32, i32) {
    %c0_i32 = arith.constant 0 : i32
    %c0_i32_0 = arith.constant 0 : i32
    return %arg0, %c0_i32 : i32, i32
  }
  func.func @transform_1(%arg0: i32) -> (i32, i32) {
    %c0_i32 = arith.constant 0 : i32
    %c0_i32_0 = arith.constant 0 : i32
    return %arg0, %c0_i32 : i32, i32
  }
  func.func @transform_2(%arg0: i32) -> (i32, i32) {
    %c0_i32 = arith.constant 0 : i32
    %c0_i32_0 = arith.constant 0 : i32
    return %arg0, %c0_i32 : i32, i32
  }
  func.func @transform_3(%arg0: i32) -> (i32, i32) {
    %c0_i32 = arith.constant 0 : i32
    %c0_i32_0 = arith.constant 0 : i32
    %c0_i32_1 = arith.constant 0 : i32
    return %c0_i32, %c0_i32_0 : i32, i32
  }
  func.func @transform_4(%arg0: i32) -> (i32, i32) {
    %c0_i32 = arith.constant 0 : i32
    %c0_i32_0 = arith.constant 0 : i32
    %c0_i32_1 = arith.constant 0 : i32
    return %c0_i32, %c0_i32_0 : i32, i32
  }
  func.func @transform_5(%arg0: i32) -> (i32, i32) {
    %c0_i32 = arith.constant 0 : i32
    %c0_i32_0 = arith.constant 0 : i32
    %c0_i32_1 = arith.constant 0 : i32
    return %c0_i32, %c0_i32_0 : i32, i32
  }
  func.func @transform_6(%arg0: i32) -> (i32, i32) {
    %c0_i32 = arith.constant 0 : i32
    %c0_i32_0 = arith.constant 0 : i32
    return %arg0, %c0_i32 : i32, i32
  }
  func.func @transform_7(%arg0: i32) -> (i32, i32) {
    %c0_i32 = arith.constant 0 : i32
    %c0_i32_0 = arith.constant 0 : i32
    return %arg0, %c0_i32 : i32, i32
  }
}

</mosaic_0001>

<bundles_post_ra>
// kernel: lstm_cell_forward.1
= control target key start
LH: loop header
LB: loop body
LE: loop exit
PB: predicated region body
PF: predicated region fallthrough
CT: control target
= control target key end

     0   :  { %13 = vsyncpa [#allocation3], 0  ;;  %s808_s0 = inlined_call_operand.hbm [shape: f32[8,32], index: 0, kind: input, shape index: {}]   ;;  %s809_s1 = inlined_call_operand.hbm [shape: f32[8,32], index: 1, kind: input, shape index: {}]   ;;  %s810_s2 = inlined_call_operand.hbm [shape: f32[8,32], index: 2, kind: input, shape index: {}]   ;;  %s811_s3 = inlined_call_operand.hbm [shape: bf16[32,128], index: 3, kind: input, shape index: {}]   ;;  %s812_s4 = inlined_call_operand.hbm [shape: bf16[32,128], index: 4, kind: input, shape index: {}]   ;;  %s813_s5 = inlined_call_operand.vmem [shape: f32[1,128], index: 5, kind: input, shape index: {}]   ;;  %s814_s6 = inlined_call_operand.hbm [shape: f32[8,32], index: 6, kind: output, shape index: {0}]   ;;  %s815_s7 = inlined_call_operand.hbm [shape: f32[8,32], index: 7, kind: output, shape index: {1}]  }
   0x1   :  { %14 = vsyncpa [#allocation6], 0 }
   0x2   :  { %15 = vsyncpa [#allocation9], 0 }
   0x3   :  { %16 = vsyncpa [#allocation4], 0 }
   0x4   :  { %17 = vsyncpa [#allocation13], 0  ;;  %s637_s24 = smov [#allocation5]   ;;  %s638_s26 = smov [#allocation8]  }
   0x5   :  { %s34_s25 = sshll.u32 %s637_s24, 4  ;;  %s53_s27 = sshll.u32 %s638_s26, 4  ;;  %s35_s25 = int_to_ptr.vmem [resolvable:$true] %s34_s25  ;;  %s690_s27 = int_to_ptr.vmem [resolvable:$true] %s53_s27 }
   0x6   :  { %s473_s30 = scalar_lea.hbm %s809_s1, 128 }
   0x7   :  { %p474_p0 = scmp.ne.s32.totalorder %s809_s1, %s473_s30  ;;  %p477_p1 = scmp.lt.u32.totalorder %s473_s30, %s809_s1 }
   0x9   :  { %p479_p2 = pnand %p477_p1, %p474_p0 }
   0xb   :  { %482 = shalt.err (!%p479_p2)
}
   0xc   :  { %s483_s12 = scalar_lea.vmem %s35_s25, 128  ;;  %p488_p4 = scmp.lt.s32.totalorder %s35_s25, %s35_s25 }
   0xd   :  { %p484_p3 = scmp.ne.s32.totalorder %s35_s25, %s483_s12  ;;  %p489_p5 = scmp.lt.s32.totalorder %s483_s12, %s483_s12 }
   0xf   :  { %p490_p6 = por %p489_p5, %p488_p4 }
  0x11   :  { %p491_p7 = pnand %p490_p6, %p484_p3 }
  0x13   :  { %494 = shalt.err (!%p491_p7)
}
  0x14   :  { %37 = dma.hbm_to_vmem [thread:$0]  %s809_s1, 128, %s35_s25, [#allocation6]  }
  0x15   :  { %s495_s17 = scalar_lea.hbm %s811_s3, 256 }
  0x16   :  { %p496_p8 = scmp.ne.s32.totalorder %s811_s3, %s495_s17  ;;  %p499_p9 = scmp.lt.u32.totalorder %s495_s17, %s811_s3 }
  0x18   :  { %p501_p10 = pnand %p499_p9, %p496_p8 }
  0x1a   :  { %504 = shalt.err (!%p501_p10)
}
  0x1b   :  { %s505_s22 = scalar_lea.vmem %s690_s27, 256  ;;  %p510_p12 = scmp.lt.s32.totalorder %s690_s27, %s690_s27 }
  0x1c   :  { %p506_p11 = scmp.ne.s32.totalorder %s690_s27, %s505_s22  ;;  %p511_p13 = scmp.lt.s32.totalorder %s505_s22, %s505_s22 }
  0x1e   :  { %p512_p0 = por %p511_p13, %p510_p12 }
  0x20   :  { %p513_p1 = pnand %p512_p0, %p506_p11 }
  0x22   :  { %516 = shalt.err (!%p513_p1)
}
  0x23   :  { %s639_s1 = smov 64   ;;  %s640_s23 = smov 4  }
  0x24   :  { %59 = dma.hbm_to_vmem [thread:$0]  %s811_s3, 256, %s690_s27, [#allocation9], %s639_s1, %s639_s1, %s640_s23  }
  0x25   :  { %s641_s26 = smov [#allocation2]   ;;  %s642_s29 = smov [#allocation7]  }
  0x26   :  { %s24_s28 = sshll.u32 %s641_s26, 4  ;;  %s44_s30 = sshll.u32 %s642_s29, 4  ;;  %s25_s28 = int_to_ptr.vmem [resolvable:$true] %s24_s28  ;;  %s45_s30 = int_to_ptr.vmem [resolvable:$true] %s44_s30 }
  0x27   :  { %s517_s10 = scalar_lea.hbm %s808_s0, 128 }
  0x28   :  { %p518_p2 = scmp.ne.s32.totalorder %s808_s0, %s517_s10  ;;  %p521_p3 = scmp.lt.u32.totalorder %s517_s10, %s808_s0 }
  0x2a   :  { %p523_p4 = pnand %p521_p3, %p518_p2 }
  0x2c   :  { %526 = shalt.err (!%p523_p4)
}
  0x2d   :  { %s527_s3 = scalar_lea.vmem %s25_s28, 128  ;;  %p532_p6 = scmp.lt.s32.totalorder %s25_s28, %s25_s28 }
  0x2e   :  { %p528_p5 = scmp.ne.s32.totalorder %s25_s28, %s527_s3  ;;  %p533_p7 = scmp.lt.s32.totalorder %s527_s3, %s527_s3 }
  0x30   :  { %p534_p8 = por %p533_p7, %p532_p6 }
  0x32   :  { %p535_p9 = pnand %p534_p8, %p528_p5 }
  0x34   :  { %538 = shalt.err (!%p535_p9)
}
  0x35   :  { %27 = dma.hbm_to_vmem [thread:$0]  %s808_s0, 128, %s25_s28, [#allocation3]  }
  0x36   :  { %s539_s18 = scalar_lea.hbm %s810_s2, 128 }
  0x37   :  { %p540_p10 = scmp.ne.s32.totalorder %s810_s2, %s539_s18  ;;  %p543_p11 = scmp.lt.u32.totalorder %s539_s18, %s810_s2 }
  0x39   :  { %p545_p12 = pnand %p543_p11, %p540_p10 }
  0x3b   :  { %548 = shalt.err (!%p545_p12)
}
  0x3c   :  { %s549_s24 = scalar_lea.vmem %s45_s30, 128  ;;  %p554_p0 = scmp.lt.s32.totalorder %s45_s30, %s45_s30 }
  0x3d   :  { %p550_p13 = scmp.ne.s32.totalorder %s45_s30, %s549_s24  ;;  %p555_p1 = scmp.lt.s32.totalorder %s549_s24, %s549_s24 }
  0x3f   :  { %p556_p2 = por %p555_p1, %p554_p0 }
  0x41   :  { %p557_p3 = pnand %p556_p2, %p550_p13 }
  0x43   :  { %560 = shalt.err (!%p557_p3)
}
  0x44   :  { %47 = dma.hbm_to_vmem [thread:$0]  %s810_s2, 128, %s45_s30, [#allocation6]  }
  0x45   :  { %s643_s26 = smov [#allocation10]   ;;  %s561_s9 = scalar_lea.hbm %s812_s4, 256 }
  0x46   :  { %s65_s28 = sshll.u32 %s643_s26, 4  ;;  %p562_p4 = scmp.ne.s32.totalorder %s812_s4, %s561_s9  ;;  %s66_s28 = int_to_ptr.vmem [resolvable:$true] %s65_s28 }
  0x47   :  { %p565_p5 = scmp.lt.u32.totalorder %s561_s9, %s812_s4 }
  0x49   :  { %p567_p6 = pnand %p565_p5, %p562_p4 }
  0x4b   :  { %570 = shalt.err (!%p567_p6)
}
  0x4c   :  { %s571_s14 = scalar_lea.vmem %s66_s28, 256  ;;  %p576_p8 = scmp.lt.s32.totalorder %s66_s28, %s66_s28 }
  0x4d   :  { %p572_p7 = scmp.ne.s32.totalorder %s66_s28, %s571_s14  ;;  %p577_p9 = scmp.lt.s32.totalorder %s571_s14, %s571_s14 }
  0x4f   :  { %p578_p10 = por %p577_p9, %p576_p8 }
  0x51   :  { %p579_p11 = pnand %p578_p10, %p572_p7 }
  0x53   :  { %582 = shalt.err (!%p579_p11)
}
  0x54   :  { %71 = dma.hbm_to_vmem [thread:$0]  %s812_s4, 256, %s66_s28, [#allocation9], %s639_s1, %s639_s1, %s640_s23  }
  0x55   :  { %627 = dma.done.wait [#allocation3], 128  }
  0x56   :  { %628 = vsyncadd [#allocation3], 4294967168 }
  0x57   :  { %629 = dma.done.wait [#allocation6], 256  }
  0x58   :  { %630 = vsyncadd [#allocation6], 4294967040 }
  0x59   :  { %631 = dma.done.wait [#allocation9], 512  }
  0x5a   :  { %632 = vsyncadd [#allocation9], 4294966784  ;;  %v644_v0 = vmov 0.0   ;;  %vm645_vm0 = vmmov 0   ;;  %v457_v1 = vld [vmem:[#allocation10] sm:$0xff]   ;;  %v458_v2 = vld [vmem:[#allocation8] sm:$0xff]  }
  0x5b   :  { %412 = vmatprep.subr.bf16.mxu0 %v644_v0  ;;  %420 = vmatprep.subr.bf16.mxu1 %v644_v0  ;;  %v459_v3 = vld [vmem:[#allocation10 + $0x8] sm:$0xff]   ;;  %s646_s3 = smov 32   ;;  %v460_v4 = vld [vmem:[#allocation8 + $0x8] sm:$0xff]   ;;  %v92_v5 = vld [vmem:[#allocation5] sm:$0xff]  ;;  %vm114_vm1 = vcmask 261120  }
  0x5c   :  { %416 = vmatprep.mubr.msk.bf16.mxu0 %vm645_vm0, %v644_v0  ;;  %424 = vmatprep.mubr.msk.bf16.mxu1 %vm645_vm0, %v644_v0  ;;  %v90_v6 = vld [vmem:[#allocation2] sm:$0xff]  ;;  %v93_v7 = vpack.c.bf16 %v92_v5, %v92_v5  ;;  %v228_v9 = vld [vmem:[#allocation7] sm:$0xff] }
  0x5d   :  { %413 = vmatpush3.bf16.msra.mxu0 %v457_v1  ;;  %245 = vrot.lane.b32.xlu0 %v457_v1, %s646_s3  ;;  %v91_v8 = vpack.c.bf16 %v90_v6, %v90_v6  ;;  %v395_v10 = vld [vmem:[%s813_s5] ss:$0 sm:$0xff]  ;;  %s647_s5 = smov 96  }
  0x5e   :  { %421 = vmatpush3.bf16.msra.mxu1 %v458_v2  ;;  %414 = vmatprep.subr.bf16.mxu0 %v644_v0 }
  0x5f   :  { %422 = vmatprep.subr.bf16.mxu1 %v644_v0  ;;  %247 = vrot.lane.b32.xlu1 %v459_v3, %s646_s3 }
  0x61   :  { %415 = vmatpush3.bf16.msra.mxu0 %v459_v3  ;;  %291 = vrot.lane.b32.xlu0 %v458_v2, %s646_s3 }
  0x62   :  { %423 = vmatpush3.bf16.msra.mxu1 %v460_v4  ;;  %428 = vmatprep.subr.bf16.mxu0 %v644_v0 }
  0x63   :  { %293 = vrot.lane.b32.xlu1 %v460_v4, %s646_s3  ;;  %436 = vmatprep.subr.bf16.mxu1 %v644_v0 }
  0x64   :  { %417 = vmatmul.mubr.msk.bf16.vlgmr.msra.gmra.mrb[0].mxu0 %vm114_vm1, %v93_v7 }
  0x65   :  { %425 = vmatmul.mubr.msk.bf16.vlgmr.msra.gmra.mrb[0].mxu1 %vm114_vm1, %v91_v8  ;;  %432 = vmatprep.mubr.msk.bf16.mxu0 %vm645_vm0, %v644_v0 }
  0x66   :  { %440 = vmatprep.mubr.msk.bf16.mxu1 %vm645_vm0, %v644_v0 }
  0x67   :  { %230 = vrot.lane.b32.xlu1 %v228_v9, %s646_s3 }
  0x6b   :  { %337 = vrot.lane.b32.xlu1 %v395_v10, %s646_s3 }
  0xcf   :  { %v246_v11 = vpop.permute.xlu0 %245 }
  0xd0   :  { %429 = vmatpush3.bf16.msra.mxu0 %v246_v11 }
  0xd1   :  { %v248_v12 = vpop.permute.xlu1 %247  ;;  %430 = vmatprep.subr.bf16.mxu0 %v644_v0 }
  0xd3   :  { %v292_v13 = vpop.permute.xlu0 %291 }
  0xd4   :  { %437 = vmatpush3.bf16.msra.mxu1 %v292_v13  ;;  %431 = vmatpush3.bf16.msra.mxu0 %v248_v12 }
  0xd5   :  { %438 = vmatprep.subr.bf16.mxu1 %v644_v0  ;;  %v294_v14 = vpop.permute.xlu1 %293 }
  0xd7   :  { %433 = vmatmul.mubr.msk.bf16.vlgmr.msra.gmra.mrb[4].mxu0 %vm114_vm1, %v93_v7 }
  0xd8   :  { %439 = vmatpush3.bf16.msra.mxu1 %v294_v14 }
  0xd9   :  { %v231_v41 = vpop.permute.xlu1 %230 }
  0xdb   :  { %441 = vmatmul.mubr.msk.bf16.vlgmr.msra.gmra.mrb[4].mxu1 %vm114_vm1, %v91_v8 }
  0xdd   :  { %v338_v46 = vpop.permute.xlu1 %337 }
 0x137   :  { %v152_v15 = vpop.f32.mrb[0].mxu0 }
 0x138   :  { %v207_v16 = vpop.f32.mrb[0].mxu1  ;;  %v418_v17 = vpop.f32.mrb[1].mxu0 }
 0x139   :  { %v208_v18 = vadd.f32 %v207_v16, %v152_v15  ;;  %v426_v19 = vpop.f32.mrb[1].mxu1  ;;  %v155_v20 = vpop.f32.mrb[2].mxu0 }
 0x13a   :  { %v210_v21 = vpop.f32.mrb[2].mxu1  ;;  %v419_v22 = vpop.f32.mrb[3].mxu0 }
 0x13b   :  { %v220_v23 = vadd.f32 %v395_v10, %v208_v18  ;;  %v427_v24 = vpop.f32.mrb[3].mxu1 }
 0x13d   :  { %461 = vtanh.f32 %v220_v23  ;;  %v396_v26 = vmul.f32 -1.442695, %v220_v23 }
 0x13f   :  { %463 = vpow2.f32 %v396_v26 }
 0x147   :  { %v462_v25 = vpop.eup %461 }
 0x148   :  { %235 = vrot.lane.b32.xlu0 %v462_v25, %s639_s1  ;;  %s648_s1 = smov [#allocation12]  }
 0x149   :  { %v464_v27 = vpop.eup %463  ;;  %s374_s27 = sshll.u32 %s648_s1, 4  ;;  %s375_s27 = int_to_ptr.vmem [resolvable:$true] %s374_s27 }
 0x14a   :  { %v224_v28 = vadd.f32 1.0, %v464_v27  ;;  %s583_s15 = scalar_lea.vmem %s375_s27, 128  ;;  %p588_p13 = scmp.lt.s32.totalorder %s375_s27, %s375_s27 }
 0x14b   :  { %p584_p12 = scmp.ne.s32.totalorder %s375_s27, %s583_s15  ;;  %p589_p0 = scmp.lt.s32.totalorder %s583_s15, %s583_s15 }
 0x14c   :  { %465 = vrcp.f32 %v224_v28 }
 0x14d   :  { %p590_p1 = por %p589_p0, %p588_p13 }
 0x14f   :  { %p591_p2 = pnand %p590_p1, %p584_p12 }
 0x156   :  { %v466_v29 = vpop.eup %465 }
 0x157   :  { %v233_v42 = vmul.f32 %v466_v29, %v231_v41 }
 0x1aa   :  { %v285_v32 = vpop.f32.mrb[4].mxu0 }
 0x1ab   :  { %v434_v35 = vpop.f32.mrb[5].mxu0 }
 0x1ac   :  { %v288_v37 = vpop.f32.mrb[6].mxu0 }
 0x1ad   :  { %v435_v39 = vpop.f32.mrb[7].mxu0 }
 0x1ae   :  { %v331_v33 = vpop.f32.mrb[4].mxu1 }
 0x1af   :  { %v332_v34 = vadd.f32 %v331_v33, %v285_v32  ;;  %v442_v36 = vpop.f32.mrb[5].mxu1 }
 0x1b0   :  { %v334_v38 = vpop.f32.mrb[6].mxu1 }
 0x1b1   :  { %v443_v40 = vpop.f32.mrb[7].mxu1  ;;  %v340_v47 = vadd.f32 %v338_v46, %v332_v34 }
 0x1b3   :  { %v399_v48 = vmul.f32 -1.442695, %v340_v47 }
 0x1ba   :  { %v236_v30 = vpop.permute.xlu0 %235 }
 0x1bb   :  { %v238_v31 = vmul.f32 %v466_v29, %v236_v30 }
 0x1bd   :  { %240 = vrot.lane.b32.xlu0 %v238_v31, %s646_s3 }
 0x22f   :  { %v241_v43 = vpop.permute.xlu0 %240 }
 0x230   :  { %v243_v44 = vadd.f32 %v241_v43, %v233_v42 }
 0x232   :  { %467 = vtanh.f32 %v243_v44  ;;  %353 = vrot.lane.b32.xlu1 %v243_v44, %s647_s5 }
 0x233   :  { %469 = vpow2.f32 %v399_v48 }
 0x23c   :  { %v468_v45 = vpop.eup %467 }
 0x23d   :  { %348 = vrot.lane.b32.xlu0 %v468_v45, %s647_s5  ;;  %v470_v49 = vpop.eup %469 }
 0x23e   :  { %v344_v50 = vadd.f32 1.0, %v470_v49 }
 0x240   :  { %471 = vrcp.f32 %v344_v50 }
 0x2a4   :  { %v354_v51 = vpop.permute.xlu1 %353 }
 0x2a5   :  { %356 = vst.msk [vmem:[#allocation12] sm:$0xff] %vm114_vm1, %v354_v51 }
 0x2a6   :  { %594 = shalt.err (!%p591_p2)
}
 0x2a7   :  { %s595_s18 = scalar_lea.hbm %s815_s7, 128 }
 0x2a8   :  { %p596_p3 = scmp.ne.s32.totalorder %s815_s7, %s595_s18  ;;  %p599_p4 = scmp.lt.u32.totalorder %s595_s18, %s815_s7 }
 0x2aa   :  { %p601_p5 = pnand %p599_p4, %p596_p3 }
 0x2ac   :  { %604 = shalt.err (!%p601_p5)
}
 0x2ad   :  { %377 = dma.vmem_to_hbm [thread:$0]  %s375_s27, 128, %s815_s7, [#allocation13]   ;;  %v472_v52 = vpop.eup %471 }
 0x2ae   :  { %s649_s25 = smov [#allocation11]  }
 0x2af   :  { %s364_s26 = sshll.u32 %s649_s25, 4  ;;  %v349_v53 = vpop.permute.xlu0 %348  ;;  %s365_s26 = int_to_ptr.vmem [resolvable:$true] %s364_s26 }
 0x2b0   :  { %v351_v54 = vmul.f32 %v472_v52, %v349_v53  ;;  %s605_s28 = scalar_lea.vmem %s365_s26, 128  ;;  %p610_p7 = scmp.lt.s32.totalorder %s365_s26, %s365_s26 }
 0x2b1   :  { %p606_p6 = scmp.ne.s32.totalorder %s365_s26, %s605_s28  ;;  %p611_p8 = scmp.lt.s32.totalorder %s605_s28, %s605_s28 }
 0x2b2   :  { %357 = vst.msk [vmem:[#allocation11] sm:$0xff] %vm114_vm1, %v351_v54 }
 0x2b3   :  { %p612_p9 = por %p611_p8, %p610_p7 }
 0x2b5   :  { %p613_p10 = pnand %p612_p9, %p606_p6 }
 0x2b7   :  { %616 = shalt.err (!%p613_p10)
}
 0x2b8   :  { %s617_s9 = scalar_lea.hbm %s814_s6, 128 }
 0x2b9   :  { %p618_p11 = scmp.ne.s32.totalorder %s814_s6, %s617_s9  ;;  %p621_p12 = scmp.lt.u32.totalorder %s617_s9, %s814_s6 }
 0x2bb   :  { %p623_p13 = pnand %p621_p12, %p618_p11 }
 0x2bd   :  { %626 = shalt.err (!%p623_p13)
}
 0x2be   :  { %367 = dma.vmem_to_hbm [thread:$0]  %s365_s26, 128, %s814_s6, [#allocation4]  }
 0x2bf   :  { %633 = dma.done.wait [#allocation4], 128  }
 0x2c0   :  { %634 = vsyncadd [#allocation4], 4294967168 }
 0x2c1   :  { %635 = dma.done.wait [#allocation13], 128  }
 0x2c2   :  { %636 = vsyncadd [#allocation13], 4294967168 }
 0x2c3   :  { %384 = vsyncpa [#allocation3], 1 }
 0x2c4   :  { %385 = vsyncpa [#allocation6], 1 }
 0x2c5   :  { %386 = vsyncpa [#allocation9], 1 }
 0x2c6   :  { %387 = vsyncpa [#allocation4], 1 }
 0x2c7   :  { %388 = vsyncpa [#allocation13], 1 }

</bundles_post_ra>
